<compile_context>
chip_gen: v5e
topology: v5e:2x2
jax: 0.10.0
libtpu: 0.0.40
codegen_flags: <defaults>
</compile_context>

<pallas_src>
import jax
import jax.numpy as jnp
from jax.experimental import pallas as pl
from jax.experimental.pallas import tpu as pltpu


_TN_MAX = 128        # template-point tile (sublane axis), multiple of 8
_TM_MAX = 4096       # source-point tile (lane axis), multiple of 128
_CHUNK = 128         # lane chunk processed per inner-loop step
_PAD_SENTINEL = 1e8  # padded points land far away from any real point


def _round_up(x, m):
    return ((x + m - 1) // m) * m


def _make_kernel(n_a, n_b, TN, TM, C, Nt, Mt):
    # Python floats / ints only -> baked as literals, never captured constants.
    inv_na = 1.0 / float(n_a)
    inv_nb = 1.0 / float(n_b)
    nchunks = TM // C
    ngroups = TN // 8
    unroll = nchunks if nchunks <= 8 else 8

    def kernel(a_ref, b_ref, out_ref, row_min, col_min, acc_a, acc_b):
        ni = pl.program_id(1)
        mi = pl.program_id(2)

        # ---- per-batch init -------------------------------------------------
        @pl.when(jnp.logical_and(ni == 0, mi == 0))
        def _():
            acc_a[...] = jnp.zeros((1, 1), jnp.float32)
            acc_b[...] = jnp.zeros((1, 1), jnp.float32)

        # ---- reset running minima at the right grid positions ---------------
        @pl.when(mi == 0)
        def _():
            row_min[...] = jnp.full((TN, C), jnp.inf, jnp.float32)

        @pl.when(ni == 0)
        def _():
            col_min[mi, :, :] = jnp.full((8, TM), jnp.inf, jnp.float32)

        # ---- fused chunked pass over the source tile -------------------------
        a = a_ref[0]                        # (TN, 3) template points on sublanes
        a0 = a[:, 0:1]                      # coordinate slices hoisted out of the
        a1 = a[:, 1:2]                      # chunk loop; the (TN,1)->(TN,C) lane
        a2 = a[:, 2:3]                      # broadcast stays per-chunk so the live
                                            # vreg set stays well under 64 vregs.

        def chunk_body(c, carry):
            off = pl.multiple_of(c * C, C)
            bch = b_ref[0, :, pl.ds(off, C)]                 # (3, C) source chunk (lanes)
            d0 = a0 - bch[0:1, :]
            d1 = a1 - bch[1:2, :]
            d2 = a2 - bch[2:3, :]
            dist2 = d0 * d0 + d1 * d1 + d2 * d2              # (TN, C)  VPU only, no sqrt

            # a -> b : lane-wide running minimum (cross-lane reduce deferred).
            row_min[...] = jnp.minimum(row_min[...], dist2)

            # b -> a : fold the TN sublanes down to one 8-sublane group with
            # static vreg slices (pure VPU), then running-min into this source
            # tile's (8, TM) buffer (full-vreg stores, no masked 1-sublane vst).
            cm = dist2[0:8, :]
            for g in range(1, ngroups):
                cm = jnp.minimum(cm, dist2[8 * g:8 * (g + 1), :])
            col_min[mi, :, pl.ds(off, C)] = jnp.minimum(
                col_min[mi, :, pl.ds(off, C)], cm)
            return carry

        jax.lax.fori_loop(0, nchunks, chunk_body, None, unroll=unroll)

        # ---- finalize a->b rows of this template tile (sqrt only on minima) --
        @pl.when(mi == Mt - 1)
        def _():
            rmin = jnp.min(row_min[...], axis=1, keepdims=True)        # (TN, 1) one XLU reduce / ni
            ridx = ni * TN + jax.lax.broadcasted_iota(jnp.int32, (TN, 1), 0)
            rsum = jnp.sum(jnp.where(ridx < n_a, jnp.sqrt(rmin), 0.0))
            acc_a[...] = acc_a[...] + rsum

        # ---- finalize b->a columns of this source tile -----------------------
        @pl.when(ni == Nt - 1)
        def _():
            cmin = jnp.min(col_min[mi, :, :], axis=0, keepdims=True)   # (1, TM) one XLU reduce / mi
            cidx = mi * TM + jax.lax.broadcasted_iota(jnp.int32, (1, TM), 1)
            csum = jnp.sum(jnp.where(cidx < n_b, jnp.sqrt(cmin), 0.0))
            acc_b[...] = acc_b[...] + csum

        # ---- emit per-batch partial loss (broadcast; wrapper reads lane 0) ---
        @pl.when(jnp.logical_and(ni == Nt - 1, mi == Mt - 1))
        def _():
            partial = acc_a[...] * inv_na + acc_b[...] * inv_nb         # (1, 1)
            out_ref[...] = jnp.broadcast_to(partial[None], (1, 1, 128))

    return kernel


def chamfer_loss_pallas(template, source):
    """template: (B, N, 3) or (N, 3); source: (B, M, 3) or (M, 3). Returns scalar."""
    if template.ndim == 2:
        template = template[None]
    if source.ndim == 2:
        source = source[None]
    B = max(template.shape[0], source.shape[0])
    if template.shape[0] != B:
        template = jnp.broadcast_to(template, (B,) + template.shape[1:])
    if source.shape[0] != B:
        source = jnp.broadcast_to(source, (B,) + source.shape[1:])

    a = template.astype(jnp.float32)
    b = source.astype(jnp.float32)
    n_a, n_b = a.shape[1], b.shape[1]

    # Chamfer loss is symmetric in (a, b): put the SMALLER cloud on the lane
    # ("b") side so the persistent per-tile col-min scratch scales with
    # min(N, M) instead of max(N, M) (matters most under v7x's 64 MiB VMEM).
    if n_b > n_a:
        a, b = b, a
        n_a, n_b = n_b, n_a

    TN = min(_TN_MAX, _round_up(n_a, 8))
    TM = min(_TM_MAX, _round_up(n_b, 128))
    C = min(_CHUNK, TM)
    N_pad = _round_up(n_a, TN)
    M_pad = _round_up(n_b, TM)
    Nt = N_pad // TN
    Mt = M_pad // TM

    # Far-away sentinel: padded points can never be the nearest neighbour of a
    # real point; padded rows/cols are additionally masked out of the sums.
    a_pad = jnp.pad(a, ((0, 0), (0, N_pad - n_a), (0, 0)),
                    constant_values=_PAD_SENTINEL)            # (B, N_pad, 3)
    b_pad = jnp.pad(b, ((0, 0), (0, M_pad - n_b), (0, 0)),
                    constant_values=_PAD_SENTINEL)            # (B, M_pad, 3)
    b_t = jnp.transpose(b_pad, (0, 2, 1))                     # (B, 3, M_pad) lane-dense

    kernel = _make_kernel(n_a, n_b, TN, TM, C, Nt, Mt)

    out = pl.pallas_call(
        kernel,
        out_shape=jax.ShapeDtypeStruct((B, 1, 128), jnp.float32),
        grid_spec=pltpu.PrefetchScalarGridSpec(
            num_scalar_prefetch=0,
            grid=(B, Nt, Mt),
            in_specs=[
                pl.BlockSpec((1, TN, 3), lambda bi, ni, mi: (bi, ni, 0)),
                pl.BlockSpec((1, 3, TM), lambda bi, ni, mi: (bi, 0, mi)),
            ],
            out_specs=pl.BlockSpec((1, 1, 128), lambda bi, ni, mi: (bi, 0, 0)),
            scratch_shapes=[
                pltpu.VMEM((TN, C), jnp.float32),       # lane-wide running row-min
                pltpu.VMEM((Mt, 8, TM), jnp.float32),   # sublane-wide running col-min per tile
                pltpu.VMEM((1, 1), jnp.float32),        # per-batch a->b partial sum
                pltpu.VMEM((1, 1), jnp.float32),        # per-batch b->a partial sum
            ],
        ),
        compiler_params=pltpu.CompilerParams(
            dimension_semantics=("parallel", "arbitrary", "arbitrary"),
        ),
    )(a_pad, b_t)

    # out[bi, 0, :] is the per-batch chamfer loss broadcast across lanes.
    return jnp.mean(out[:, 0, 0])


def _chamfer_ref(a, b):
    d = jnp.sqrt(jnp.sum((a[:, :, None, :] - b[:, None, :, :]) ** 2, axis=-1))
    return jnp.mean(jnp.min(d, axis=-1)) + jnp.mean(jnp.min(d, axis=-2))


if __name__ == "__main__":
    key = jax.random.PRNGKey(0)
    k1, k2, k3, k4, k5, k6 = jax.random.split(key, 6)

    # Batched case with N != M (exercises padding + masking).
    B, N, M = 2, 12, 9
    template = jax.random.normal(k1, (B, N, 3), dtype=jnp.float32)
    source = jax.random.normal(k2, (B, M, 3), dtype=jnp.float32)
    loss = jax.block_until_ready(chamfer_loss_pallas(template, source))
    ref = jax.block_until_ready(_chamfer_ref(template, source))
    assert jnp.allclose(loss, ref, rtol=1e-4, atol=1e-4), (loss, ref)

    # Unbatched, source larger than template (exercises the a/b swap path).
    t2 = jax.random.normal(k3, (8, 3), dtype=jnp.float32)
    s2 = jax.random.normal(k4, (20, 3), dtype=jnp.float32)
    loss2 = jax.block_until_ready(chamfer_loss_pallas(t2, s2))
    ref2 = jax.block_until_ready(_chamfer_ref(t2[None], s2[None]))
    assert jnp.allclose(loss2, ref2, rtol=1e-4, atol=1e-4), (loss2, ref2)

    # Multi-tile case (several template tiles, several lane chunks).
    t3 = jax.random.normal(k5, (1, 300, 3), dtype=jnp.float32)
    s3 = jax.random.normal(k6, (1, 200, 3), dtype=jnp.float32)
    loss3 = jax.block_until_ready(chamfer_loss_pallas(t3, s3))
    ref3 = jax.block_until_ready(_chamfer_ref(t3, s3))
    assert jnp.allclose(loss3, ref3, rtol=1e-4, atol=1e-4), (loss3, ref3)

    print("KERNEL_OK")
</pallas_src>

<mosaic_0001>
module attributes {stable_mosaic.version = 11 : i64} {
  func.func @kernel(%arg0: i32, %arg1: i32, %arg2: i32, %arg3: memref<1x16x3xf32, #tpu.memory_space<vmem>>, %arg4: memref<1x3x128xf32, #tpu.memory_space<vmem>>, %arg5: memref<1x1x128xf32, #tpu.memory_space<vmem>>, %arg6: memref<16x128xf32, #tpu.memory_space<vmem>>, %arg7: memref<1x8x128xf32, #tpu.memory_space<vmem>>, %arg8: memref<1x1xf32, #tpu.memory_space<vmem>>, %arg9: memref<1x1xf32, #tpu.memory_space<vmem>>) attributes {dimension_semantics = [#tpu.dimension_semantics<parallel>, #tpu.dimension_semantics<arbitrary>, #tpu.dimension_semantics<arbitrary>], iteration_bounds = array<i64: 2, 1, 1>, scalar_prefetch = 0 : i64, scratch_operands = 4 : i64, tpu.core_type = #tpu.core_type<tc>, window_params = [{transform_indices = @transform_0, window_bounds = array<i64: 1, 16, 3>}, {transform_indices = @transform_1, window_bounds = array<i64: 1, 3, 128>}, {transform_indices = @transform_2, window_bounds = array<i64: 1, 1, 128>}]} {
    %c0_i32 = arith.constant 0 : i32
    %0 = arith.cmpi eq, %arg1, %c0_i32 : i32
    %c0_i32_0 = arith.constant 0 : i32
    %1 = arith.cmpi eq, %arg2, %c0_i32_0 : i32
    %2 = arith.andi %0, %1 : i1
    %3 = arith.extui %2 : i1 to i32
    %c0_i32_1 = arith.constant 0 : i32
    %4 = arith.cmpi ne, %3, %c0_i32_1 : i32
    scf.if %4 {
      %cst = arith.constant 0.000000e+00 : f32
      %65 = vector.broadcast %cst : f32 to vector<1x1xf32>
      %c0_24 = arith.constant 0 : index
      %c0_25 = arith.constant 0 : index
      %66 = vector.load %arg8[%c0_24, %c0_25] : memref<1x1xf32, #tpu.memory_space<vmem>>, vector<1x1xf32>
      tpu.vector_store %arg8[%c0_24, %c0_25], %65 {strides = array<i32>} : memref<1x1xf32, #tpu.memory_space<vmem>>, vector<1x1xf32>,
      %cst_26 = arith.constant 0.000000e+00 : f32
      %67 = vector.broadcast %cst_26 : f32 to vector<1x1xf32>
      %c0_27 = arith.constant 0 : index
      %c0_28 = arith.constant 0 : index
      %68 = vector.load %arg9[%c0_27, %c0_28] : memref<1x1xf32, #tpu.memory_space<vmem>>, vector<1x1xf32>
      tpu.vector_store %arg9[%c0_27, %c0_28], %67 {strides = array<i32>} : memref<1x1xf32, #tpu.memory_space<vmem>>, vector<1x1xf32>,
    } else {
    }
    %c0_i32_2 = arith.constant 0 : i32
    %5 = arith.cmpi eq, %arg2, %c0_i32_2 : i32
    %6 = arith.extui %5 : i1 to i32
    %c0_i32_3 = arith.constant 0 : i32
    %7 = arith.cmpi ne, %6, %c0_i32_3 : i32
    scf.if %7 {
      %cst = arith.constant 0x7F800000 : f32
      %65 = vector.broadcast %cst : f32 to vector<16x128xf32>
      %c0_24 = arith.constant 0 : index
      %c0_25 = arith.constant 0 : index
      %66 = vector.load %arg6[%c0_24, %c0_25] : memref<16x128xf32, #tpu.memory_space<vmem>>, vector<16x128xf32>
      tpu.vector_store %arg6[%c0_24, %c0_25], %65 {strides = array<i32>} : memref<16x128xf32, #tpu.memory_space<vmem>>, vector<16x128xf32>,
    } else {
    }
    %c0_i32_4 = arith.constant 0 : i32
    %8 = arith.cmpi eq, %arg1, %c0_i32_4 : i32
    %9 = arith.extui %8 : i1 to i32
    %c0_i32_5 = arith.constant 0 : i32
    %10 = arith.cmpi ne, %9, %c0_i32_5 : i32
    scf.if %10 {
      %cst = arith.constant 0x7F800000 : f32
      %65 = vector.broadcast %cst : f32 to vector<8x128xf32>
      %66 = arith.index_cast %arg2 : i32 to index
      %c0_24 = arith.constant 0 : index
      %c0_25 = arith.constant 0 : index
      %67 = vector.load %arg7[%66, %c0_24, %c0_25] : memref<1x8x128xf32, #tpu.memory_space<vmem>>, vector<1x8x128xf32>
      %68 = vector.shape_cast %67 : vector<1x8x128xf32> to vector<8x128xf32>
      %69 = vector.shape_cast %65 : vector<8x128xf32> to vector<1x8x128xf32>
      tpu.vector_store %arg7[%66, %c0_24, %c0_25], %69 {strides = array<i32>} : memref<1x8x128xf32, #tpu.memory_space<vmem>>, vector<1x8x128xf32>,
    } else {
    }
    %c0 = arith.constant 0 : index
    %c0_6 = arith.constant 0 : index
    %c0_7 = arith.constant 0 : index
    %11 = vector.load %arg3[%c0, %c0_6, %c0_7] : memref<1x16x3xf32, #tpu.memory_space<vmem>>, vector<1x16x3xf32>
    %12 = vector.shape_cast %11 : vector<1x16x3xf32> to vector<16x3xf32>
    %13 = vector.extract_strided_slice %12 {offsets = [0, 0], sizes = [16, 1], strides = [1, 1]} : vector<16x3xf32> to vector<16x1xf32>
    %14 = vector.extract_strided_slice %12 {offsets = [0, 1], sizes = [16, 1], strides = [1, 1]} : vector<16x3xf32> to vector<16x1xf32>
    %15 = vector.extract_strided_slice %12 {offsets = [0, 2], sizes = [16, 1], strides = [1, 1]} : vector<16x3xf32> to vector<16x1xf32>
    %c0_i32_8 = arith.constant 0 : i32
    %c128_i32 = arith.constant 128 : i32
    %16 = arith.muli %c0_i32_8, %c128_i32 : i32
    %17 = tpu.assume_multiple %16, 128 : i32
    %c0_9 = arith.constant 0 : index
    %c0_10 = arith.constant 0 : index
    %18 = arith.index_cast %17 : i32 to index
    %19 = vector.load %arg4[%c0_9, %c0_10, %18] : memref<1x3x128xf32, #tpu.memory_space<vmem>>, vector<1x3x128xf32>
    %20 = vector.shape_cast %19 : vector<1x3x128xf32> to vector<3x128xf32>
    %21 = vector.extract_strided_slice %20 {offsets = [0, 0], sizes = [1, 128], strides = [1, 1]} : vector<3x128xf32> to vector<1x128xf32>
    %22 = vector.broadcast %13 : vector<16x1xf32> to vector<16x128xf32>
    %23 = vector.broadcast %21 : vector<1x128xf32> to vector<16x128xf32>
    %24 = arith.subf %22, %23 : vector<16x128xf32>
    %25 = vector.extract_strided_slice %20 {offsets = [1, 0], sizes = [1, 128], strides = [1, 1]} : vector<3x128xf32> to vector<1x128xf32>
    %26 = vector.broadcast %14 : vector<16x1xf32> to vector<16x128xf32>
    %27 = vector.broadcast %25 : vector<1x128xf32> to vector<16x128xf32>
    %28 = arith.subf %26, %27 : vector<16x128xf32>
    %29 = vector.extract_strided_slice %20 {offsets = [2, 0], sizes = [1, 128], strides = [1, 1]} : vector<3x128xf32> to vector<1x128xf32>
    %30 = vector.broadcast %15 : vector<16x1xf32> to vector<16x128xf32>
    %31 = vector.broadcast %29 : vector<1x128xf32> to vector<16x128xf32>
    %32 = arith.subf %30, %31 : vector<16x128xf32>
    %33 = arith.mulf %24, %24 : vector<16x128xf32>
    %34 = arith.mulf %28, %28 : vector<16x128xf32>
    %35 = arith.addf %33, %34 : vector<16x128xf32>
    %36 = arith.mulf %32, %32 : vector<16x128xf32>
    %37 = arith.addf %35, %36 : vector<16x128xf32>
    %c0_11 = arith.constant 0 : index
    %c0_12 = arith.constant 0 : index
    %38 = vector.load %arg6[%c0_11, %c0_12] : memref<16x128xf32, #tpu.memory_space<vmem>>, vector<16x128xf32>
    %39 = arith.minimumf %38, %37 : vector<16x128xf32>
    %c0_13 = arith.constant 0 : index
    %c0_14 = arith.constant 0 : index
    %40 = vector.load %arg6[%c0_13, %c0_14] : memref<16x128xf32, #tpu.memory_space<vmem>>, vector<16x128xf32>
    tpu.vector_store %arg6[%c0_13, %c0_14], %39 {strides = array<i32>} : memref<16x128xf32, #tpu.memory_space<vmem>>, vector<16x128xf32>,
    %41 = vector.extract_strided_slice %37 {offsets = [0, 0], sizes = [8, 128], strides = [1, 1]} : vector<16x128xf32> to vector<8x128xf32>
    %42 = vector.extract_strided_slice %37 {offsets = [8, 0], sizes = [8, 128], strides = [1, 1]} : vector<16x128xf32> to vector<8x128xf32>
    %43 = arith.minimumf %41, %42 : vector<8x128xf32>
    %44 = arith.index_cast %arg2 : i32 to index
    %c0_15 = arith.constant 0 : index
    %45 = arith.index_cast %17 : i32 to index
    %46 = vector.load %arg7[%44, %c0_15, %45] : memref<1x8x128xf32, #tpu.memory_space<vmem>>, vector<1x8x128xf32>
    %47 = vector.shape_cast %46 : vector<1x8x128xf32> to vector<8x128xf32>
    %48 = arith.minimumf %47, %43 : vector<8x128xf32>
    %49 = arith.index_cast %arg2 : i32 to index
    %c0_16 = arith.constant 0 : index
    %50 = arith.index_cast %17 : i32 to index
    %51 = vector.load %arg7[%49, %c0_16, %50] : memref<1x8x128xf32, #tpu.memory_space<vmem>>, vector<1x8x128xf32>
    %52 = vector.shape_cast %51 : vector<1x8x128xf32> to vector<8x128xf32>
    %53 = vector.shape_cast %48 : vector<8x128xf32> to vector<1x8x128xf32>
    tpu.vector_store %arg7[%49, %c0_16, %50], %53 {strides = array<i32>} : memref<1x8x128xf32, #tpu.memory_space<vmem>>, vector<1x8x128xf32>,
    %c1_i32 = arith.constant 1 : i32
    %c0_i32_17 = arith.constant 0 : i32
    %54 = arith.cmpi eq, %arg2, %c0_i32_17 : i32
    %55 = arith.extui %54 : i1 to i32
    %c0_i32_18 = arith.constant 0 : i32
    %56 = arith.cmpi ne, %55, %c0_i32_18 : i32
    scf.if %56 {
      %c0_24 = arith.constant 0 : index
      %c0_25 = arith.constant 0 : index
      %65 = vector.load %arg6[%c0_24, %c0_25] : memref<16x128xf32, #tpu.memory_space<vmem>>, vector<16x128xf32>
      %cst = arith.constant dense<0x7F800000> : vector<16xf32>
      %66 = vector.multi_reduction <minimumf>, %65, %cst [1] : vector<16x128xf32> to vector<16xf32>
      %67 = vector.shape_cast %66 : vector<16xf32> to vector<16x1xf32>
      %c16_i32 = arith.constant 16 : i32
      %68 = arith.muli %arg1, %c16_i32 : i32
      %69 = tpu.iota {dimensions = array<i32: 0>} : vector<16x1xi32>
      %70 = vector.broadcast %68 : i32 to vector<16x1xi32>
      %71 = arith.addi %70, %69 : vector<16x1xi32>
      %c12_i32 = arith.constant 12 : i32
      %72 = vector.broadcast %c12_i32 : i32 to vector<16x1xi32>
      %73 = arith.cmpi slt, %71, %72 : vector<16x1xi32>
      %74 = math.sqrt %67 : vector<16x1xf32>
      %cst_26 = arith.constant 0.000000e+00 : f32
      %75 = vector.broadcast %cst_26 : f32 to vector<16x1xf32>
      %76 = arith.select %73, %74, %75 : vector<16x1xi1>, vector<16x1xf32>
      %77 = vector.shape_cast %76 : vector<16x1xf32> to vector<1x16x1xf32>
      %cst_27 = arith.constant dense<0.000000e+00> : vector<1xf32>
      %78 = vector.multi_reduction <add>, %77, %cst_27 [1, 2] : vector<1x16x1xf32> to vector<1xf32>
      %79 = vector.shape_cast %78 : vector<1xf32> to vector<1x1x1xf32>
      %80 = vector.extract %79[0, 0, 0] : f32 from vector<1x1x1xf32>
      %c0_28 = arith.constant 0 : index
      %c0_29 = arith.constant 0 : index
      %81 = vector.load %arg8[%c0_28, %c0_29] : memref<1x1xf32, #tpu.memory_space<vmem>>, vector<1x1xf32>
      %82 = vector.broadcast %80 : f32 to vector<1x1xf32>
      %83 = arith.addf %81, %82 : vector<1x1xf32>
      %c0_30 = arith.constant 0 : index
      %c0_31 = arith.constant 0 : index
      %84 = vector.load %arg8[%c0_30, %c0_31] : memref<1x1xf32, #tpu.memory_space<vmem>>, vector<1x1xf32>
      tpu.vector_store %arg8[%c0_30, %c0_31], %83 {strides = array<i32>} : memref<1x1xf32, #tpu.memory_space<vmem>>, vector<1x1xf32>,
    } else {
    }
    %c0_i32_19 = arith.constant 0 : i32
    %57 = arith.cmpi eq, %arg1, %c0_i32_19 : i32
    %58 = arith.extui %57 : i1 to i32
    %c0_i32_20 = arith.constant 0 : i32
    %59 = arith.cmpi ne, %58, %c0_i32_20 : i32
    scf.if %59 {
      %65 = arith.index_cast %arg2 : i32 to index
      %c0_24 = arith.constant 0 : index
      %c0_25 = arith.constant 0 : index
      %66 = vector.load %arg7[%65, %c0_24, %c0_25] : memref<1x8x128xf32, #tpu.memory_space<vmem>>, vector<1x8x128xf32>
      %67 = vector.shape_cast %66 : vector<1x8x128xf32> to vector<8x128xf32>
      %cst = arith.constant dense<0x7F800000> : vector<128xf32>
      %68 = vector.multi_reduction <minimumf>, %67, %cst [0] : vector<8x128xf32> to vector<128xf32>
      %69 = vector.shape_cast %68 : vector<128xf32> to vector<1x128xf32>
      %c128_i32_26 = arith.constant 128 : i32
      %70 = arith.muli %arg2, %c128_i32_26 : i32
      %71 = tpu.iota {dimensions = array<i32: 1>} : vector<1x128xi32>
      %72 = vector.broadcast %70 : i32 to vector<1x128xi32>
      %73 = arith.addi %72, %71 : vector<1x128xi32>
      %c9_i32 = arith.constant 9 : i32
      %74 = vector.broadcast %c9_i32 : i32 to vector<1x128xi32>
      %75 = arith.cmpi slt, %73, %74 : vector<1x128xi32>
      %76 = math.sqrt %69 : vector<1x128xf32>
      %cst_27 = arith.constant 0.000000e+00 : f32
      %77 = vector.broadcast %cst_27 : f32 to vector<1x128xf32>
      %78 = arith.select %75, %76, %77 : vector<1x128xi1>, vector<1x128xf32>
      %79 = vector.shape_cast %78 : vector<1x128xf32> to vector<1x1x128xf32>
      %cst_28 = arith.constant dense<0.000000e+00> : vector<1xf32>
      %80 = vector.multi_reduction <add>, %79, %cst_28 [1, 2] : vector<1x1x128xf32> to vector<1xf32>
      %81 = vector.shape_cast %80 : vector<1xf32> to vector<1x1x1xf32>
      %82 = vector.extract %81[0, 0, 0] : f32 from vector<1x1x1xf32>
      %c0_29 = arith.constant 0 : index
      %c0_30 = arith.constant 0 : index
      %83 = vector.load %arg9[%c0_29, %c0_30] : memref<1x1xf32, #tpu.memory_space<vmem>>, vector<1x1xf32>
      %84 = vector.broadcast %82 : f32 to vector<1x1xf32>
      %85 = arith.addf %83, %84 : vector<1x1xf32>
      %c0_31 = arith.constant 0 : index
      %c0_32 = arith.constant 0 : index
      %86 = vector.load %arg9[%c0_31, %c0_32] : memref<1x1xf32, #tpu.memory_space<vmem>>, vector<1x1xf32>
      tpu.vector_store %arg9[%c0_31, %c0_32], %85 {strides = array<i32>} : memref<1x1xf32, #tpu.memory_space<vmem>>, vector<1x1xf32>,
    } else {
    }
    %c0_i32_21 = arith.constant 0 : i32
    %60 = arith.cmpi eq, %arg1, %c0_i32_21 : i32
    %c0_i32_22 = arith.constant 0 : i32
    %61 = arith.cmpi eq, %arg2, %c0_i32_22 : i32
    %62 = arith.andi %60, %61 : i1
    %63 = arith.extui %62 : i1 to i32
    %c0_i32_23 = arith.constant 0 : i32
    %64 = arith.cmpi ne, %63, %c0_i32_23 : i32
    scf.if %64 {
      %c0_24 = arith.constant 0 : index
      %c0_25 = arith.constant 0 : index
      %65 = vector.load %arg8[%c0_24, %c0_25] : memref<1x1xf32, #tpu.memory_space<vmem>>, vector<1x1xf32>
      %cst = arith.constant 0.0833333358 : f32
      %66 = vector.broadcast %cst : f32 to vector<1x1xf32>
      %67 = arith.mulf %65, %66 : vector<1x1xf32>
      %c0_26 = arith.constant 0 : index
      %c0_27 = arith.constant 0 : index
      %68 = vector.load %arg9[%c0_26, %c0_27] : memref<1x1xf32, #tpu.memory_space<vmem>>, vector<1x1xf32>
      %cst_28 = arith.constant 0.111111112 : f32
      %69 = vector.broadcast %cst_28 : f32 to vector<1x1xf32>
      %70 = arith.mulf %68, %69 : vector<1x1xf32>
      %71 = arith.addf %67, %70 : vector<1x1xf32>
      %72 = vector.shape_cast %71 : vector<1x1xf32> to vector<1x1x1xf32>
      %73 = vector.shape_cast %72 : vector<1x1x1xf32> to vector<1x1x1xf32>
      %74 = vector.broadcast %73 : vector<1x1x1xf32> to vector<1x1x128xf32>
      %c0_29 = arith.constant 0 : index
      %c0_30 = arith.constant 0 : index
      %c0_31 = arith.constant 0 : index
      %75 = vector.load %arg5[%c0_29, %c0_30, %c0_31] : memref<1x1x128xf32, #tpu.memory_space<vmem>>, vector<1x1x128xf32>
      tpu.vector_store %arg5[%c0_29, %c0_30, %c0_31], %74 {strides = array<i32>} : memref<1x1x128xf32, #tpu.memory_space<vmem>>, vector<1x1x128xf32>,
    } else {
    }
    return
  }
  func.func @transform_0(%arg0: i32, %arg1: i32, %arg2: i32) -> (i32, i32, i32) {
    %c0_i32 = arith.constant 0 : i32
    %c0_i32_0 = arith.constant 0 : i32
    return %arg0, %arg1, %c0_i32 : i32, i32, i32
  }
  func.func @transform_1(%arg0: i32, %arg1: i32, %arg2: i32) -> (i32, i32, i32) {
    %c0_i32 = arith.constant 0 : i32
    %c0_i32_0 = arith.constant 0 : i32
    return %arg0, %c0_i32, %arg2 : i32, i32, i32
  }
  func.func @transform_2(%arg0: i32, %arg1: i32, %arg2: i32) -> (i32, i32, i32) {
    %c0_i32 = arith.constant 0 : i32
    %c0_i32_0 = arith.constant 0 : i32
    %c0_i32_1 = arith.constant 0 : i32
    return %arg0, %c0_i32, %c0_i32_0 : i32, i32, i32
  }
}

</mosaic_0001>

<bundles_post_ra>
// kernel: tpu_custom_call.1
= control target key start
LH: loop header
LB: loop body
LE: loop exit
PB: predicated region body
PF: predicated region fallthrough
CT: control target
= control target key end

     0   :  { %7 = vsyncpa [#allocation7], 0  ;;  %s803_s0 = inlined_call_operand.vmem [shape: f32[2,16,3], index: 0, kind: input, shape index: {}]   ;;  %s804_s1 = inlined_call_operand.vmem [shape: f32[2,3,128], index: 1, kind: input, shape index: {}]   ;;  %s805_s2 = inlined_call_operand.hbm [shape: f32[2,1,128], index: 2, kind: output, shape index: {}]  }
   0x1   :  { %9 = vsyncpa [#allocation7 + $0x1], 0  ;;  %s699_s9 = smov 0   ;;  %s701_s10 = smov 0  }
   0x2   :  { %s703_s11 = smov 0   ;;  %s705_s12 = smov 0  }
   0x3   :  { %s707_s13 = smov 0   ;;  %s709_s14 = smov 0  }
   0x4 LB: > { %s513_s15 = sadd.s32 4294967295, %s678_s14   ;;  %s514_s16 = sadd.s32 4294967294, %s678_s14   ;;  %s678_s14 = sphi %s709_s14, %s15_s14   ;;  %s674_s13 = sphi %s707_s13, %s812_s13   ;;  %s670_s12 = sphi %s705_s12, %s811_s12   ;;  %s666_s11 = sphi %s703_s11, %s810_s11   ;;  %s662_s10 = sphi %s701_s10, %s809_s10   ;;  %s658_s9 = sphi %s699_s9, %s808_s9  }
   0x5   : > { %s34_s17 = sadd.s32 1, %s674_s13  ;;  %s97_s18 = sadd.s32 1, %s666_s11 }
   0x6   : > { %p36_p0 = scmp.ge.s32.totalorder %s34_s17, 2  ;;  %p107_p1 = scmp.ne.s32.totalorder %s666_s11, %s662_s10 }
   0x7   : > { %p108_p2 = scmp.eq.s32.totalorder %s513_s15, 1  ;;  %p113_p3 = scmp.ne.s32.totalorder %s662_s10, %s658_s9 }
   0x8   : > { %s814_s17 = smov (%p36_p0, %s34_s17), 0  ;;  %p114_p5 = scmp.eq.s32.totalorder %s514_s16, 1 }
   0x9   : > { %p739_p4 = por %p108_p2, %p107_p1  ;;  %s94_s20 = ssub.s32 %s674_s13, %s814_s17 }
   0xa   : > { %p517_p6 = scmp.ge.s32.totalorder %s678_s14, 1  ;;  %p95_p7 = scmp.eq.s32.totalorder %s94_s20, 0 }
   0xb   : > { %p746_p8 = por %p114_p5, %p113_p3  ;;  %p155_p9 = scmp.lt.s32.totalorder %s678_s14, 3 }
   0xc   : > { %s752_s22 = scalar_select %p95_p7, %s666_s11, %s97_s18  }
   0xd   : > { %p156_p10 = pnand %p517_p6, %p155_p9 }
   0xe   : > { %p188_p11 = scmp.lt.s32.totalorder (!%p156_p10), %s670_s12, 1  ;;  %s185_s6 = sand.u32 (!%p156_p10), 1, %s662_s10  }
   0xf   : > { %159 = sbr.rel (%p156_p10) target bundleno = 613 (0x265), region = 28  ;;  %s416_s15 = scalar_lea.hbm (!%p156_p10), %s805_s2, %s670_s12 }
  0x10   : > { %s186_s16 = scalar_lea.vmem (!%p156_p10), [#allocation6], %s185_s6  ;;  %s420_s20 = sshll.u32 (!%p156_p10), %s416_s15, 4  ;;  %s421_s20 = int_to_ptr.hbm [resolvable:$true] %s420_s20 }
  0x11   : > { %s418_s18 = sshll.u32 (!%p156_p10), %s186_s16, 4  ;;  %s419_s18 = int_to_ptr.vmem [resolvable:$true] %s418_s18 }
  0x14   : > { %v680_v0 = vmov 0   ;;  %s189_s23 = scalar_select %p188_p11, %s670_s12, 1  ;;  %v681_v1 = vmov 2   ;;  %v682_v4 = vmov 1   ;;  %v295_v41 = vlaneseq }
  0x15   : > { %589 = vset.pattern.permute.xlu1 %v680_v0  ;;  %587 = vset.pattern.permute.xlu0 %v680_v0  ;;  %vm377_vm3 = vcmask 1040384   ;;  %vm329_vm6 = vcmask 7168   ;;  %vm210_vm10 = vcmask 0   ;;  %s620_s12 = scalar_lea.hbm %s805_s2, 2 }
  0x16   : > { %591 = vset.pattern.permute.xlu2 %v681_v1  ;;  %s523_s24 = sshll.u32 %s189_s23, 4  ;;  %s520_s28 = sshll.u32 %s189_s23, 2  ;;  %v360_v44 = vand.u32 127, %v295_v41  ;;  %v296_v58 = vshrl.u32 %v295_v41, 7 }
  0x17   : > { %s195_s27 = scalar_lea.vmem %s803_s0, %s523_s24  ;;  %s203_s3 = scalar_lea.vmem %s804_s1, %s520_s28 }
  0x18   : > { %v225_v2 = vld [vmem:[%s195_s27 + $0x8] sm:$0xff]  ;;  %v224_v3 = vld [vmem:[%s195_s27] sm:$0xff]  ;;  %vm363_vm0 = vcmp.lt.s32.totalorder %v360_v44, 9  ;;  %v297_v63 = vadd.s32 8, %v296_v58  ;;  %s408_s23 = scalar_lea.sflag [#allocation7], %s185_s6  ;;  %s614_s24 = sshra.s32 %s421_s20, 4  ;;  %s615_s24 = int_to_ptr.hbm [resolvable:$true] %s614_s24 }
  0x19   : > { %234 = vperm.xlu0 %587, %v225_v2   ;;  %229 = vperm.xlu1 %589, %v224_v3   ;;  %v226_v8 = vld [vmem:[%s203_s3] sm:$0x7]  ;;  %s616_s25 = scalar_lea.hbm %s615_s24, 1  ;;  %p621_p1 = scmp.lt.s32.totalorder %s615_s24, %s805_s2 }
  0x1a   : > { %256 = vperm.xlu2 %591, %v225_v2   ;;  %v237_v9 = vperm.slane %v226_v8, 0  ;;  %v259_v10 = vperm.slane %v226_v8, 2  ;;  %v248_v11 = vperm.slane %v226_v8, 1  ;;  %vm302_vm4 = vcmp.lt.s32.totalorder %v297_v63, 12  ;;  %p617_p12 = scmp.ne.s32.totalorder %s615_s24, %s616_s25  ;;  %p622_p2 = scmp.lt.s32.totalorder %s620_s12, %s616_s25 }
  0x1c   : > { %p618_p13 = pnand %p617_p12, %p739_p4  ;;  %p623_p3 = por %p622_p2, %p621_p1 }
  0x1e   : > { %p619_p0 = pneg %p618_p13 }
  0x20   : > { %p624_p5 = pnand %p623_p3, %p619_p0 }
  0x21   : > { %588 = vset.pattern.permute.xlu0 %v682_v4  ;;  %590 = vset.pattern.permute.xlu1 %v682_v4 }
  0x22   : > { %245 = vperm.xlu0 %588, %v225_v2   ;;  %241 = vperm.xlu1 %590, %v224_v3  }
  0x23   : > { %252 = vperm.xlu2 %591, %v224_v3  }
  0x2a   : > { %592 = vset.pattern.permute.xlu1 %v680_v0  ;;  %593 = vset.pattern.permute.xlu0 %v680_v0 }
  0x74   : > { %v257_v5 = vpop.permute.xlu2 %256 }
  0x75   : > { %v261_v17 = vsub.f32 %v257_v5, %v259_v10 }
  0x77   : > { %v269_v25 = vmul.f32 %v261_v17, %v261_v17 }
  0x7d   : > { %v253_v12 = vpop.permute.xlu2 %252 }
  0x7e   : > { %v260_v18 = vsub.f32 %v253_v12, %v259_v10 }
  0x80   : > { %v268_v26 = vmul.f32 %v260_v18, %v260_v18 }
  0x8b   : > { %v235_v6 = vpop.permute.xlu0 %234  ;;  %v230_v7 = vpop.permute.xlu1 %229 }
  0x8c   : > { %v239_v13 = vsub.f32 %v235_v6, %v237_v9  ;;  %v238_v14 = vsub.f32 %v230_v7, %v237_v9 }
  0x8e   : > { %v263_v21 = vmul.f32 %v239_v13, %v239_v13  ;;  %v262_v22 = vmul.f32 %v238_v14, %v238_v14 }
  0x94   : > { %v246_v15 = vpop.permute.xlu0 %245  ;;  %v242_v16 = vpop.permute.xlu1 %241 }
  0x95   : > { %v250_v19 = vsub.f32 %v246_v15, %v248_v11  ;;  %v249_v20 = vsub.f32 %v242_v16, %v248_v11  ;;  %v683_v16 = vmov 0.0  }
  0x96   : > { %211 = vst.msk [vmem:[#allocation4] sm:$0x1] %vm210_vm10, %v683_v16 }
  0x97   : > { %v265_v23 = vmul.f32 %v250_v19, %v250_v19  ;;  %v264_v24 = vmul.f32 %v249_v20, %v249_v20  ;;  %212 = vst.msk [vmem:[#allocation5] sm:$0x1] %vm210_vm10, %v683_v16 }
  0x99   : > { %v267_v27 = vadd.f32 %v265_v23, %v263_v21  ;;  %v266_v28 = vadd.f32 %v264_v24, %v262_v22 }
  0x9b   : > { %v271_v29 = vadd.f32 %v269_v25, %v267_v27  ;;  %v270_v30 = vadd.f32 %v268_v26, %v266_v28 }
  0x9d   : > { %292 = vmin.xlane.f32.xlu1 %v271_v29  ;;  %290 = vmin.xlane.f32.xlu2 %v270_v30  ;;  %v278_v31 = vmin.f32 %v270_v30, %v271_v29 }
  0x9f   : > { %v352_v32 = vrot.slane %v278_v31, 4 }
  0xa1   : > { %v353_v33 = vmin.f32 %v278_v31, %v352_v32  ;;  %v342_v31 = vld [vmem:[#allocation4] sm:$0x1]  ;;  %v388_v32 = vld [vmem:[#allocation5] sm:$0x1] }
  0xa3   : > { %v354_v34 = vrot.slane %v353_v33, 2 }
  0xa5   : > { %v355_v35 = vmin.f32 %v353_v33, %v354_v34 }
  0xa7   : > { %v356_v36 = vrot.slane %v355_v35, 1 }
  0xa9   : > { %v357_v37 = vmin.f32 %v355_v35, %v356_v36 }
  0xab   : > { %594 = vrsqrt.f32 %v357_v37  ;;  %vm371_vm1 = vcmp.eq.f32.partialorder %v357_v37, inf  ;;  %v374_v47 = vand.u32 2147483648, %v357_v37  ;;  %vm373_vm2 = vcmp.eq.f32.partialorder %v357_v37, 0.0 }
  0xb1   : > { %v595_v38 = vpop.eup %594 }
  0xb2   : > { %v365_v39 = vmul.f32 %v595_v38, %v357_v37 }
  0xb4   : > { %v366_v40 = vmul.f32 %v595_v38, %v365_v39 }
  0xb6   : > { %v367_v42 = vmul.f32 0.5, %v366_v40 }
  0xb8   : > { %v368_v43 = vsub.f32 1.5, %v367_v42 }
  0xba   : > { %v369_v45 = vmul.f32 %v595_v38, %v368_v43 }
  0xbc   : > { %v370_v46 = vmul.f32 %v369_v45, %v357_v37 }
  0xbe   : > { %v372_v48 = vsel %vm371_vm1, %v357_v37, %v370_v46 }
  0xbf   : > { %v375_v49 = vsel %vm373_vm2, %v374_v47, %v372_v48 }
  0xc0   : > { %v376_v50 = vsel %vm363_vm0, %v375_v49, 0.0 }
  0xc1   : > { %v378_v51 = vsel %vm377_vm3, %v376_v50, 0.0 }
  0xc2   : > { %379 = vadd.xlane.f32.xlu2 %v378_v51 }
 0x110   : > { %v291_v52 = vpop.xlane.xlu2 %290  ;;  %v293_v53 = vpop.xlane.xlu1 %292 }
 0x111   : > { %596 = vrsqrt.f32 %v291_v52  ;;  %vm310_vm5 = vcmp.eq.f32.partialorder %v291_v52, inf  ;;  %v313_v5 = vand.u32 2147483648, %v291_v52  ;;  %vm312_vm7 = vcmp.eq.f32.partialorder %v291_v52, 0.0 }
 0x112   : > { %598 = vrsqrt.f32 %v293_v53  ;;  %vm322_vm8 = vcmp.eq.f32.partialorder %v293_v53, inf  ;;  %v325_v8 = vand.u32 2147483648, %v293_v53  ;;  %vm324_vm9 = vcmp.eq.f32.partialorder %v293_v53, 0.0 }
 0x117   : > { %v597_v54 = vpop.eup %596 }
 0x118   : > { %v599_v55 = vpop.eup %598  ;;  %v304_v56 = vmul.f32 %v597_v54, %v291_v52 }
 0x119   : > { %v316_v57 = vmul.f32 %v599_v55, %v293_v53 }
 0x11a   : > { %v305_v59 = vmul.f32 %v597_v54, %v304_v56 }
 0x11b   : > { %v317_v60 = vmul.f32 %v599_v55, %v316_v57 }
 0x11c   : > { %v306_v61 = vmul.f32 0.5, %v305_v59 }
 0x11d   : > { %v318_v62 = vmul.f32 0.5, %v317_v60 }
 0x11e   : > { %v307_v0 = vsub.f32 1.5, %v306_v61 }
 0x11f   : > { %v319_v1 = vsub.f32 1.5, %v318_v62 }
 0x120   : > { %v308_v2 = vmul.f32 %v597_v54, %v307_v0 }
 0x121   : > { %v320_v3 = vmul.f32 %v599_v55, %v319_v1 }
 0x122   : > { %v309_v4 = vmul.f32 %v308_v2, %v291_v52 }
 0x123   : > { %v321_v6 = vmul.f32 %v320_v3, %v293_v53 }
 0x124   : > { %v311_v7 = vsel %vm310_vm5, %v291_v52, %v309_v4 }
 0x125   : > { %v314_v9 = vsel %vm312_vm7, %v313_v5, %v311_v7  ;;  %v323_v10 = vsel %vm322_vm8, %v293_v53, %v321_v6 }
 0x126   : > { %v326_v11 = vsel %vm324_vm9, %v325_v8, %v323_v10  ;;  %v330_v12 = vsel %vm329_vm6, %v314_v9, 0.0 }
 0x127   : > { %v328_v13 = vsel %vm302_vm4, %v326_v11, 0.0 }
 0x128   : > { %v331_v14 = vsel %vm329_vm6, %v328_v13, 0.0 }
 0x129   : > { %v332_v15 = vadd.f32 %v331_v14, %v330_v12 }
 0x12b   : > { %333 = vadd.xlane.f32.xlu0 %v332_v15 }
 0x135   : > { %v380_v17 = vpop.xlane.xlu2 %379 }
 0x136   : > { %v381_v18 = vrot.slane %v380_v17, 4 }
 0x138   : > { %v382_v19 = vadd.f32 %v381_v18, %v380_v17 }
 0x13a   : > { %v383_v20 = vrot.slane %v382_v19, 2 }
 0x13c   : > { %v384_v24 = vadd.f32 %v383_v20, %v382_v19 }
 0x13e   : > { %v385_v27 = vrot.slane %v384_v24, 1 }
 0x140   : > { %v386_v30 = vadd.f32 %v385_v27, %v384_v24 }
 0x19e   : > { %v334_v21 = vpop.xlane.xlu0 %333 }
 0x19f   : > { %v335_v22 = vrot.slane %v334_v21, 4 }
 0x1a1   : > { %v336_v23 = vadd.f32 %v335_v22, %v334_v21 }
 0x1a3   : > { %v337_v25 = vrot.slane %v336_v23, 2 }
 0x1a5   : > { %v338_v26 = vadd.f32 %v337_v25, %v336_v23 }
 0x1a7   : > { %v339_v28 = vrot.slane %v338_v26, 1 }
 0x1a9   : > { %v340_v29 = vadd.f32 %v339_v28, %v338_v26 }
 0x1ab   : > { %524 = vpush %v340_v29 }
 0x1ac   : > { %526 = vpush %v386_v30 }
 0x1dc   : > { %s525_s4 = spop %524 }
 0x1dd   : > { %v343_v33 = vstv %s525_s4  ;;  %s527_s5 = spop %526 }
 0x1de   : > { %v344_v34 = vadd.f32 %v343_v33, %v342_v31  ;;  %v389_v35 = vstv %s527_s5 }
 0x1df   : > { %v390_v36 = vadd.f32 %v389_v35, %v388_v32 }
 0x1e0   : > { %346 = vst.msk [vmem:[#allocation4] sm:$0x1] %vm210_vm10, %v344_v34 }
 0x1e1   : > { %392 = vst.msk [vmem:[#allocation5] sm:$0x1] %vm210_vm10, %v390_v36 }
 0x1e7   : > { %v395_v37 = vld [vmem:[#allocation4] sm:$0x1] }
 0x1e8   : > { %v396_v38 = vmul.f32 0.083333336, %v395_v37  ;;  %v397_v39 = vld [vmem:[#allocation5] sm:$0x1] }
 0x1e9   : > { %v398_v40 = vmul.f32 0.11111111, %v397_v39 }
 0x1eb   : > { %v399_v41 = vadd.f32 %v398_v40, %v396_v38 }
 0x1ed   : > { %402 = vperm.xlu1 %592, %v399_v41  }
 0x25f   : > { %v403_v42 = vpop.permute.xlu1 %402 }
 0x260   : > { %v405_v43 = vperm.slane %v403_v42, 0 }
 0x262   : > { %406 = vst [vmem:[%s186_s16] sm:$0x1] %v405_v43 }
 0x263   : > { %627 = shalt.err (!%p624_p5)
}
 0x264   : > { %528 = dma.vmem_to_hbm [thread:$0]  (%p739_p4), %s419_s18, 16, %s421_s20, %s408_s23  }
 0x265 PF: > { %p534_p6 = scmp.ge.s32.totalorder %s678_s14, 2  ;;  %s432_s30 = sand.u32 1, %s658_s9  }
 0x266   : > { %s433_s3 = scalar_lea.sflag [#allocation7], %s432_s30 }
 0x267   : > { %p531_p7 = pnand %p534_p6, %p746_p8 }
 0x269   : > { %p532_p9 = pneg %p531_p7 }
 0x26b   : > { %653 = dma.done.wait (%p532_p9), %s433_s3, 16  }
 0x26c   : > { %655 = vsyncadd (%p532_p9), %s433_s3, 4294967280  ;;  %s15_s14 = sadd.s32 1, %s678_s14   ;;  %s808_s9 = smov %s662_s10 }
 0x26d   : > { %p12_p10 = scmp.ge.s32.totalorder %s15_s14, 4   ;;  %s809_s10 = smov %s666_s11 }
 0x26e   : > { %s810_s11 = smov %s752_s22  ;;  %s811_s12 = smov %s674_s13 }
 0x26f   : > { %s812_s13 = smov %s814_s17  ;;  %14 = sbr.rel (!%p12_p10) target bundleno = 4 (0x4), region = 93 }
 0x274   :  { %438 = vsyncpa [#allocation7], 1 }
 0x275   :  { %440 = vsyncpa [#allocation7 + $0x1], 1 }

</bundles_post_ra>
